<compile_context>
chip_gen: v5e
topology: v5e:2x2
jax: 0.10.0
libtpu: 0.0.40
codegen_flags: <defaults>
</compile_context>

<pallas_src>
import jax
import jax.numpy as jnp
from jax.experimental import pallas as pl
from jax.experimental.pallas import tpu as pltpu

IN_F = 16
H1 = 128
H2 = 64
OUT_F = 4


def _round_up(x, m):
    return (x + m - 1) // m * m


def dqn_kernel(x_ref, w1_ref, b1_ref, w2_ref, b2_ref, w3_ref, b3_ref, o_ref):
    # 3 MXU matmuls (f32, f32 accumulate) + VPU bias-add / ReLU.
    x = x_ref[...]                                                      # (TB, 16)
    h1 = jnp.dot(x, w1_ref[...], preferred_element_type=jnp.float32)   # (TB, 128)
    h1 = jnp.maximum(h1 + b1_ref[...], 0.0)
    h2 = jnp.dot(h1, w2_ref[...], preferred_element_type=jnp.float32)  # (TB, 64)
    h2 = jnp.maximum(h2 + b2_ref[...], 0.0)
    o = jnp.dot(h2, w3_ref[...], preferred_element_type=jnp.float32)   # (TB, 4)
    o_ref[...] = o + b3_ref[...]


def dqn_forward(x, params):
    """x: (B, ...) whose trailing dims flatten to 16.  Returns (B, 4) float32."""
    B = x.shape[0]
    x2d = x.reshape(B, -1).astype(jnp.float32)        # nn.Flatten() (metadata reshape)
    assert x2d.shape[1] == IN_F, "DQN expects 16 input features after flatten"
    w1, b1, w2, b2, w3, b3 = params

    # Batch tile: big enough to amortize per-step overhead, small enough that
    # large batches produce >= 2 grid steps (v7x megacore sharding of the
    # "parallel" batch axis).  VMEM footprint is tiny at any of these sizes.
    if B <= 16:
        TB = _round_up(B, 8)
    else:
        TB = min(4096, _round_up(pl.cdiv(B, 2), 16))
    grid = (pl.cdiv(B, TB),)

    cost = pl.CostEstimate(
        flops=2 * B * (IN_F * H1 + H1 * H2 + H2 * OUT_F),
        transcendentals=0,
        bytes_accessed=4 * (B * IN_F + B * OUT_F
                            + IN_F * H1 + H1 * H2 + H2 * OUT_F
                            + H1 + H2 + OUT_F),
    )

    resident = lambda i: (0, 0)   # weights/biases stay pinned in VMEM across steps
    out = pl.pallas_call(
        dqn_kernel,
        out_shape=jax.ShapeDtypeStruct((B, OUT_F), jnp.float32),
        grid=grid,
        in_specs=[
            pl.BlockSpec((TB, IN_F), lambda i: (i, 0)),     # x: streamed per tile
            pl.BlockSpec((IN_F, H1), resident),             # W1
            pl.BlockSpec((1, H1), resident),                # b1
            pl.BlockSpec((H1, H2), resident),               # W2
            pl.BlockSpec((1, H2), resident),                # b2
            pl.BlockSpec((H2, OUT_F), resident),            # W3
            pl.BlockSpec((1, OUT_F), resident),             # b3
        ],
        out_specs=pl.BlockSpec((TB, OUT_F), lambda i: (i, 0)),
        compiler_params=pltpu.CompilerParams(
            dimension_semantics=("parallel",),
        ),
        cost_estimate=cost,
    )(x2d, w1, b1, w2, b2, w3, b3)

    return out


def init_params(key):
    """Deterministic init mimicking nn.Linear default: U(-1/sqrt(fan_in), 1/sqrt(fan_in))."""
    dims = [(IN_F, H1), (H1, H2), (H2, OUT_F)]
    params = []
    for (fan_in, fan_out) in dims:
        key, kw, kb = jax.random.split(key, 3)
        bound = 1.0 / jnp.sqrt(fan_in)
        w = jax.random.uniform(kw, (fan_in, fan_out), jnp.float32, -bound, bound)
        b = jax.random.uniform(kb, (1, fan_out), jnp.float32, -bound, bound)
        params += [w, b]
    return params


def dqn_reference(x, params):
    """Plain-JAX f32 reference for correctness check."""
    B = x.shape[0]
    h = x.reshape(B, -1).astype(jnp.float32)
    w1, b1, w2, b2, w3, b3 = params
    h = jnp.maximum(h @ w1 + b1, 0.0)
    h = jnp.maximum(h @ w2 + b2, 0.0)
    return h @ w3 + b3


if __name__ == "__main__":
    key = jax.random.PRNGKey(0)
    kx, kp = jax.random.split(key)

    B = 8
    # Input chosen as (B, 4, 4) so nn.Flatten() yields the 16 features Linear(16, ...) expects.
    x = jax.random.normal(kx, (B, 4, 4), jnp.float32)
    params = init_params(kp)

    out = dqn_forward(x, params)
    out = jax.block_until_ready(out)

    ref = dqn_reference(x, params)
    assert out.shape == (B, OUT_F)
    # MXU default precision may use bf16 passes for f32 operands -> modest tolerance.
    assert jnp.allclose(out, ref, atol=2e-2, rtol=2e-2), "mismatch vs reference"

    print("KERNEL_OK")
</pallas_src>

<mosaic_0001>
module attributes {stable_mosaic.version = 11 : i64} {
  func.func @dqn_kernel(%arg0: i32, %arg1: memref<8x16xf32, #tpu.memory_space<vmem>>, %arg2: memref<16x128xf32, #tpu.memory_space<vmem>>, %arg3: memref<1x128xf32, #tpu.memory_space<vmem>>, %arg4: memref<128x64xf32, #tpu.memory_space<vmem>>, %arg5: memref<1x64xf32, #tpu.memory_space<vmem>>, %arg6: memref<64x4xf32, #tpu.memory_space<vmem>>, %arg7: memref<1x4xf32, #tpu.memory_space<vmem>>, %arg8: memref<8x4xf32, #tpu.memory_space<vmem>>) attributes {dimension_semantics = [#tpu.dimension_semantics<parallel>], iteration_bounds = array<i64: 1>, scalar_prefetch = 0 : i64, scratch_operands = 0 : i64, tpu.core_type = #tpu.core_type<tc>, window_params = [{transform_indices = @transform_0, window_bounds = array<i64: 8, 16>}, {pipeline_mode = #tpu.pipeline_mode<synchronous>, transform_indices = @transform_1, window_bounds = array<i64: 16, 128>}, {pipeline_mode = #tpu.pipeline_mode<synchronous>, transform_indices = @transform_2, window_bounds = array<i64: 1, 128>}, {pipeline_mode = #tpu.pipeline_mode<synchronous>, transform_indices = @transform_3, window_bounds = array<i64: 128, 64>}, {pipeline_mode = #tpu.pipeline_mode<synchronous>, transform_indices = @transform_4, window_bounds = array<i64: 1, 64>}, {pipeline_mode = #tpu.pipeline_mode<synchronous>, transform_indices = @transform_5, window_bounds = array<i64: 64, 4>}, {pipeline_mode = #tpu.pipeline_mode<synchronous>, transform_indices = @transform_6, window_bounds = array<i64: 1, 4>}, {transform_indices = @transform_7, window_bounds = array<i64: 8, 4>}]} {
    %c0 = arith.constant 0 : index
    %c0_0 = arith.constant 0 : index
    %0 = vector.load %arg1[%c0, %c0_0] : memref<8x16xf32, #tpu.memory_space<vmem>>, vector<8x16xf32>
    %c0_1 = arith.constant 0 : index
    %c0_2 = arith.constant 0 : index
    %1 = vector.load %arg2[%c0_1, %c0_2] : memref<16x128xf32, #tpu.memory_space<vmem>>, vector<16x128xf32>
    %cst = arith.constant dense<0.000000e+00> : vector<8x128xf32>
    %2 = tpu.matmul %0, %1, %cst {dimension_numbers = #tpu.dot_dimension_numbers<[1], [0], [0], [1], [0, 0, 1, 1], [], []>} : vector<8x16xf32>, vector<16x128xf32>, vector<8x128xf32> -> vector<8x128xf32>
    %c0_3 = arith.constant 0 : index
    %c0_4 = arith.constant 0 : index
    %3 = vector.load %arg3[%c0_3, %c0_4] : memref<1x128xf32, #tpu.memory_space<vmem>>, vector<1x128xf32>
    %4 = vector.broadcast %3 : vector<1x128xf32> to vector<8x128xf32>
    %5 = arith.addf %2, %4 : vector<8x128xf32>
    %cst_5 = arith.constant 0.000000e+00 : f32
    %6 = vector.broadcast %cst_5 : f32 to vector<8x128xf32>
    %7 = arith.maximumf %5, %6 : vector<8x128xf32>
    %c0_6 = arith.constant 0 : index
    %c0_7 = arith.constant 0 : index
    %8 = vector.load %arg4[%c0_6, %c0_7] : memref<128x64xf32, #tpu.memory_space<vmem>>, vector<128x64xf32>
    %cst_8 = arith.constant dense<0.000000e+00> : vector<8x64xf32>
    %9 = tpu.matmul %7, %8, %cst_8 {dimension_numbers = #tpu.dot_dimension_numbers<[1], [0], [0], [1], [0, 0, 1, 1], [], []>} : vector<8x128xf32>, vector<128x64xf32>, vector<8x64xf32> -> vector<8x64xf32>
    %c0_9 = arith.constant 0 : index
    %c0_10 = arith.constant 0 : index
    %10 = vector.load %arg5[%c0_9, %c0_10] : memref<1x64xf32, #tpu.memory_space<vmem>>, vector<1x64xf32>
    %11 = vector.broadcast %10 : vector<1x64xf32> to vector<8x64xf32>
    %12 = arith.addf %9, %11 : vector<8x64xf32>
    %cst_11 = arith.constant 0.000000e+00 : f32
    %13 = vector.broadcast %cst_11 : f32 to vector<8x64xf32>
    %14 = arith.maximumf %12, %13 : vector<8x64xf32>
    %c0_12 = arith.constant 0 : index
    %c0_13 = arith.constant 0 : index
    %15 = vector.load %arg6[%c0_12, %c0_13] : memref<64x4xf32, #tpu.memory_space<vmem>>, vector<64x4xf32>
    %cst_14 = arith.constant dense<0.000000e+00> : vector<8x4xf32>
    %16 = tpu.matmul %14, %15, %cst_14 {dimension_numbers = #tpu.dot_dimension_numbers<[1], [0], [0], [1], [0, 0, 1, 1], [], []>} : vector<8x64xf32>, vector<64x4xf32>, vector<8x4xf32> -> vector<8x4xf32>
    %c0_15 = arith.constant 0 : index
    %c0_16 = arith.constant 0 : index
    %17 = vector.load %arg7[%c0_15, %c0_16] : memref<1x4xf32, #tpu.memory_space<vmem>>, vector<1x4xf32>
    %18 = vector.broadcast %17 : vector<1x4xf32> to vector<8x4xf32>
    %19 = arith.addf %16, %18 : vector<8x4xf32>
    %c0_17 = arith.constant 0 : index
    %c0_18 = arith.constant 0 : index
    %20 = vector.load %arg8[%c0_17, %c0_18] : memref<8x4xf32, #tpu.memory_space<vmem>>, vector<8x4xf32>
    tpu.vector_store %arg8[%c0_17, %c0_18], %19 {strides = array<i32>} : memref<8x4xf32, #tpu.memory_space<vmem>>, vector<8x4xf32>,
    return
  }
  func.func @transform_0(%arg0: i32) -> (i32, i32) {
    %c0_i32 = arith.constant 0 : i32
    %c0_i32_0 = arith.constant 0 : i32
    return %arg0, %c0_i32 : i32, i32
  }
  func.func @transform_1(%arg0: i32) -> (i32, i32) {
    %c0_i32 = arith.constant 0 : i32
    %c0_i32_0 = arith.constant 0 : i32
    %c0_i32_1 = arith.constant 0 : i32
    return %c0_i32, %c0_i32_0 : i32, i32
  }
  func.func @transform_2(%arg0: i32) -> (i32, i32) {
    %c0_i32 = arith.constant 0 : i32
    %c0_i32_0 = arith.constant 0 : i32
    %c0_i32_1 = arith.constant 0 : i32
    return %c0_i32, %c0_i32_0 : i32, i32
  }
  func.func @transform_3(%arg0: i32) -> (i32, i32) {
    %c0_i32 = arith.constant 0 : i32
    %c0_i32_0 = arith.constant 0 : i32
    %c0_i32_1 = arith.constant 0 : i32
    return %c0_i32, %c0_i32_0 : i32, i32
  }
  func.func @transform_4(%arg0: i32) -> (i32, i32) {
    %c0_i32 = arith.constant 0 : i32
    %c0_i32_0 = arith.constant 0 : i32
    %c0_i32_1 = arith.constant 0 : i32
    return %c0_i32, %c0_i32_0 : i32, i32
  }
  func.func @transform_5(%arg0: i32) -> (i32, i32) {
    %c0_i32 = arith.constant 0 : i32
    %c0_i32_0 = arith.constant 0 : i32
    %c0_i32_1 = arith.constant 0 : i32
    return %c0_i32, %c0_i32_0 : i32, i32
  }
  func.func @transform_6(%arg0: i32) -> (i32, i32) {
    %c0_i32 = arith.constant 0 : i32
    %c0_i32_0 = arith.constant 0 : i32
    %c0_i32_1 = arith.constant 0 : i32
    return %c0_i32, %c0_i32_0 : i32, i32
  }
  func.func @transform_7(%arg0: i32) -> (i32, i32) {
    %c0_i32 = arith.constant 0 : i32
    %c0_i32_0 = arith.constant 0 : i32
    return %arg0, %c0_i32 : i32, i32
  }
}

</mosaic_0001>

<bundles_post_ra>
// kernel: tpu_custom_call.1
= control target key start
LH: loop header
LB: loop body
LE: loop exit
PB: predicated region body
PF: predicated region fallthrough
CT: control target
= control target key end

     0   :  { %vm33_vm0 = vcmask 130048   ;;  %vm111_vm1 = vcmask 523264   ;;  %vm135_vm2 = vcmask 31744   ;;  %s279_s1 = inlined_call_operand.vmem [shape: f32[16,128], index: 1, kind: input, shape index: {}]   ;;  %s280_s0 = inlined_call_operand.vmem [shape: f32[8,16], index: 0, kind: input, shape index: {}]   ;;  %s281_s3 = inlined_call_operand.vmem [shape: f32[128,64], index: 3, kind: input, shape index: {}]   ;;  %s282_s2 = inlined_call_operand.vmem [shape: f32[1,128], index: 2, kind: input, shape index: {}]   ;;  %s283_s4 = inlined_call_operand.vmem [shape: f32[1,64], index: 4, kind: input, shape index: {}]   ;;  %s284_s5 = inlined_call_operand.vmem [shape: f32[64,4], index: 5, kind: input, shape index: {}]   ;;  %s285_s6 = inlined_call_operand.vmem [shape: f32[1,4], index: 6, kind: input, shape index: {}]   ;;  %s286_s7 = inlined_call_operand.vmem [shape: f32[8,4], index: 7, kind: output, shape index: {}]  }
   0x1   :  { %v28_v0 = vld [vmem:[%s279_s1 + $0x8] sm:$0xff]  ;;  %v27_v1 = vld [vmem:[%s279_s1] sm:$0xff]  ;;  %v73_v3 = vld [vmem:[%s281_s3 + $0x78] sm:$0xff] }
   0x2   :  { %51 = vmatpush.msra.mxu0 %v28_v0  ;;  %v26_v2 = vld [vmem:[%s280_s0] sm:$0xff]  ;;  %v72_v4 = vld [vmem:[%s281_s3 + $0x70] sm:$0xff]  ;;  %78 = vmatpush.msra.mxu1 %v73_v3  ;;  %v71_v5 = vld [vmem:[%s281_s3 + $0x68] sm:$0xff] }
   0x3   :  { %v70_v6 = vld [vmem:[%s281_s3 + $0x60] sm:$0xff]  ;;  %v69_v7 = vld [vmem:[%s281_s3 + $0x58] sm:$0xff]  ;;  %v68_v8 = vld [vmem:[%s281_s3 + $0x50] sm:$0xff] }
   0x4   :  { %52 = vmatpush.msra.mxu0 %v27_v1  ;;  %79 = vmatpush.msra.mxu1 %v72_v4  ;;  %v67_v9 = vld [vmem:[%s281_s3 + $0x48] sm:$0xff]  ;;  %v66_v10 = vld [vmem:[%s281_s3 + $0x40] sm:$0xff]  ;;  %v65_v11 = vld [vmem:[%s281_s3 + $0x38] sm:$0xff] }
   0x5   :  { %141 = vmatmul.msk.f32.vlgmr.msra.gmra.mxu0 %vm33_vm0, %v26_v2  ;;  %v64_v12 = vld [vmem:[%s281_s3 + $0x30] sm:$0xff]  ;;  %v63_v13 = vld [vmem:[%s281_s3 + $0x28] sm:$0xff]  ;;  %v62_v14 = vld [vmem:[%s281_s3 + $0x20] sm:$0xff] }
   0x6   :  { %80 = vmatpush.msra.mxu1 %v71_v5  ;;  %v61_v15 = vld [vmem:[%s281_s3 + $0x18] sm:$0xff]  ;;  %v60_v16 = vld [vmem:[%s281_s3 + $0x10] sm:$0xff]  ;;  %v59_v17 = vld [vmem:[%s281_s3 + $0x8] sm:$0xff] }
   0x7   :  { %v58_v18 = vld [vmem:[%s281_s3] sm:$0xff]  ;;  %v106_v19 = vld [vmem:[%s284_s5 + $0x38] sm:$0xff]  ;;  %v105_v20 = vld [vmem:[%s284_s5 + $0x30] sm:$0xff] }
   0x8   :  { %81 = vmatpush.msra.mxu1 %v70_v6  ;;  %123 = vmatpush.msra.mxu2 %v106_v19  ;;  %v104_v21 = vld [vmem:[%s284_s5 + $0x28] sm:$0xff]  ;;  %v103_v22 = vld [vmem:[%s284_s5 + $0x20] sm:$0xff]  ;;  %v102_v23 = vld [vmem:[%s284_s5 + $0x18] sm:$0xff] }
   0x9   :  { %v143_v24 = vld [vmem:[%s282_s2] ss:$0 sm:$0xff]  ;;  %v101_v28 = vld [vmem:[%s284_s5 + $0x10] sm:$0xff]  ;;  %v100_v29 = vld [vmem:[%s284_s5 + $0x8] sm:$0xff] }
   0xa   :  { %82 = vmatpush.msra.mxu1 %v69_v7  ;;  %124 = vmatpush.msra.mxu2 %v105_v20  ;;  %v99_v30 = vld [vmem:[%s284_s5] sm:$0xff] }
   0xb   :  { %v144_v31 = vld [vmem:[%s283_s4] ss:$0 sm:$0xff] }
   0xc   :  { %83 = vmatpush.msra.mxu1 %v68_v8  ;;  %125 = vmatpush.msra.mxu2 %v104_v21  ;;  %v145_v35 = vld [vmem:[%s285_s6] ss:$0 sm:$0xff] }
   0xe   :  { %84 = vmatpush.msra.mxu1 %v67_v9  ;;  %126 = vmatpush.msra.mxu2 %v103_v22 }
  0x10   :  { %85 = vmatpush.msra.mxu1 %v66_v10  ;;  %127 = vmatpush.msra.mxu2 %v102_v23 }
  0x12   :  { %86 = vmatpush.msra.mxu1 %v65_v11  ;;  %128 = vmatpush.msra.mxu2 %v101_v28 }
  0x14   :  { %87 = vmatpush.msra.mxu1 %v64_v12  ;;  %129 = vmatpush.msra.mxu2 %v100_v29 }
  0x16   :  { %88 = vmatpush.msra.mxu1 %v63_v13  ;;  %130 = vmatpush.msra.mxu2 %v99_v30 }
  0x18   :  { %89 = vmatpush.msra.mxu1 %v62_v14 }
  0x1a   :  { %90 = vmatpush.msra.mxu1 %v61_v15 }
  0x1c   :  { %91 = vmatpush.msra.mxu1 %v60_v16 }
  0x1e   :  { %92 = vmatpush.msra.mxu1 %v59_v17 }
  0x20   :  { %93 = vmatpush.msra.mxu1 %v58_v18 }
  0x82   :  { %v54_v25 = vpop.f32.mrf.mxu0 }
  0x83   :  { %v55_v26 = vadd.f32 %v143_v24, %v54_v25 }
  0x85   :  { %v57_v27 = vmax.f32 %v55_v26, 0.0 }
  0x87   :  { %94 = vmatmul.f32.vlgmr.msra.gmra.mxu1 %v57_v27 }
 0x104   :  { %v95_v32 = vpop.f32.mrf.mxu1 }
 0x105   :  { %v96_v33 = vadd.f32 %v144_v31, %v95_v32 }
 0x107   :  { %v98_v34 = vmax.f32 %v96_v33, 0.0 }
 0x109   :  { %142 = vmatmul.msk.f32.vlgmr.msra.gmra.mxu2 %vm111_vm1, %v98_v34 }
 0x18c   :  { %v132_v36 = vpop.f32.mrf.mxu2 }
 0x18d   :  { %v133_v37 = vadd.f32 %v145_v35, %v132_v36 }
 0x18f   :  { %136 = vst.msk [vmem:[%s286_s7] sm:$0xff] %vm135_vm2, %v133_v37 }

</bundles_post_ra>
